<compile_context>
chip_gen: v7x
topology: tpu7x:2x2x1
jax: 0.10.0
libtpu: 0.0.40
codegen_flags: <defaults>
</compile_context>

<pallas_src>
import functools

import jax
import jax.numpy as jnp
from jax import lax
from jax.experimental import pallas as pl
from jax.experimental.pallas import tpu as pltpu

_GRAY_COEFFS = (65.738 / 256.0, 129.057 / 256.0, 25.064 / 256.0)
_EPS = 1e-6


def _grad_mag(gv):
    # weight_v is reused for x_v, x_h and x_d in the reference module.
    return jnp.sqrt(3.0 * gv * gv + _EPS)


def _grad_loss_kernel(out_ref, gt_ref, part_ref, *, do_gray, total_rows, need_mask):
    """Blocks: out_ref / gt_ref = (1, C, D, TR, L); part_ref = (1, OUT_ROWS, L)."""
    _, c, d, tr, l = out_ref.shape
    f32 = jnp.float32

    def gray(ref, dd):
        if do_gray:
            c0, c1, c2 = _GRAY_COEFFS
            return (ref[0, 0, dd].astype(f32) * c0
                    + ref[0, 1, dd].astype(f32) * c1
                    + ref[0, 2, dd].astype(f32) * c2)
        return ref[0, 0, dd].astype(f32)

    acc = jnp.zeros((tr, l), f32)

    if d > 1:
        # Streamed depth central difference: grad[dd] only needs gray[dd-1] and
        # gray[dd+1] (zero at the boundaries).  Every gray plane is computed
        # exactly once and stays live for at most two iterations (O(1) VMEM).
        # TODO(synk): for very large static D this trace-time unroll could be
        # swapped for a lax.fori_loop with carried planes.
        o_m1 = g_m1 = None                       # gray at dd-1 (None == zeros)
        o_cur, g_cur = gray(out_ref, 0), gray(gt_ref, 0)
        for dd in range(d):
            o_p1 = gray(out_ref, dd + 1) if dd + 1 < d else None
            g_p1 = gray(gt_ref, dd + 1) if dd + 1 < d else None
            if o_m1 is None:                     # dd == 0   : gv =  gray[1]
                gvo, gvg = o_p1, g_p1
            elif o_p1 is None:                   # dd == D-1 : gv = -gray[D-2]
                gvo, gvg = o_m1, g_m1            # sign drops inside gv^2
            else:
                gvo, gvg = o_p1 - o_m1, g_p1 - g_m1
            acc = acc + jnp.abs(_grad_mag(gvo) - _grad_mag(gvg))
            o_m1, o_cur = o_cur, o_p1
            g_m1, g_cur = g_cur, g_p1
    # d == 1: gv == 0 everywhere -> both grads equal sqrt(eps) -> acc stays 0.

    if need_mask:
        # Ragged last row-tile: rows >= total_rows hold unspecified OOB data;
        # zero them with a select so NaN/Inf garbage cannot leak into the sum.
        j = pl.program_id(1)
        valid = jnp.minimum(tr, total_rows - j * tr)
        row_ids = lax.broadcasted_iota(jnp.int32, (tr, l), 0)
        acc = jnp.where(row_ids < valid, acc, 0.0)

    if tr % 8 == 0:
        # Tile-aligned sublane-group reduce (pure VALU adds across vreg groups).
        part = acc.reshape(tr // 8, 8, l).sum(axis=0)
    else:
        part = acc                                # tr == rows < 8 case
    part_ref[...] = part.reshape(part_ref.shape)


def _round_up(x, m):
    return -(-x // m) * m


def _vmem_capacity_bytes():
    try:
        return int(pltpu.get_tpu_info().vmem_capacity_bytes)
    except Exception:
        return 64 * 1024 * 1024                   # v7x: smallest VMEM of v5e/v6e/v7x


def _spatial_view(h, w, itemsize):
    """Pick a free-reshape (rows, lanes) factorization of (H, W)."""
    hw = h * w
    if hw % 128 == 0:
        return hw // 128, 128                     # perfectly lane dense
    # Fold k rows of H into the lane axis (k | H): maximize lane utilization,
    # prefer smaller k (more rows -> finer row tiling) on ties.
    best_k, best_util = 1, -1.0
    for k in range(1, h + 1):
        if h % k:
            continue
        lw = k * w
        if lw * itemsize > 64 * 1024:             # keep row granularity usable
            continue
        util = lw / float(_round_up(lw, 128))
        if util > best_util + 1e-9:
            best_util, best_k = util, k
    return h // best_k, best_k * w


def _pick_row_tile(rows, lanes, c, d, itemsize, n, capacity):
    """Largest row tile (multiple of 8) fitting the real VMEM budget."""
    if rows < 8:
        return rows
    lanes_pad = _round_up(lanes, 128)
    in_row = c * d * lanes_pad * itemsize          # one row-slab of one input block
    f32_row = lanes_pad * 4
    # 2 inputs x 2 pipeline buffers + ~12 live f32 planes of the streamed reduce.
    per_row = 4 * in_row + 12 * f32_row
    budget = int(0.70 * capacity)
    tr_vmem = max(8, (budget // per_row) // 8 * 8)
    tr_blk = max(8, ((8 * 1024 * 1024) // in_row) // 8 * 8)   # <= ~8 MiB / input block
    min_j = max(1, -(-4 // n))                                 # aim for >= 4 grid cells
    tr_bal = max(8, _round_up(-(-rows // min_j), 8))
    return max(8, min(tr_vmem, tr_blk, tr_bal, rows // 8 * 8))


def grad_loss(output, gt_img):
    """Pallas implementation of GradLoss.forward(output, gt_img)."""
    assert output.shape == gt_img.shape
    n, c, d, h, w = output.shape
    assert c in (1, 3), "GradLayer expects 1 or 3 channels"
    do_gray = (c == 3)
    total_elems = float(n * d * h * w)            # grad tensors are (N, 1, D, H, W)
    itemsize = jnp.dtype(output.dtype).itemsize

    rows, lanes = _spatial_view(h, w, itemsize)
    xo = output.reshape(n, c, d, rows, lanes)     # contiguous -> free reshape
    xg = gt_img.reshape(n, c, d, rows, lanes)

    capacity = _vmem_capacity_bytes()
    tr = _pick_row_tile(rows, lanes, c, d, itemsize, n, capacity)
    grid_j = -(-rows // tr)
    out_rows = 8 if tr % 8 == 0 else tr
    need_mask = (rows % tr) != 0

    # VMEM actually needed: pipelined input blocks + streamed f32 working set
    # + double-buffered output, plus headroom for Mosaic internals.
    lanes_pad = _round_up(lanes, 128)
    tr_pad = _round_up(tr, 8)
    needed = (4 * c * d * tr_pad * lanes_pad * itemsize
              + 12 * tr_pad * lanes_pad * 4
              + 2 * 8 * lanes_pad * 4)
    vmem_limit = int(min(capacity, max(needed + 4 * 1024 * 1024, 16 * 1024 * 1024)))

    kernel = functools.partial(_grad_loss_kernel, do_gray=do_gray,
                               total_rows=rows, need_mask=need_mask)
    in_spec = pl.BlockSpec((1, c, d, tr, lanes), lambda i, j: (i, 0, 0, j, 0))

    parts = pl.pallas_call(
        kernel,
        out_shape=jax.ShapeDtypeStruct((n, grid_j * out_rows, lanes), jnp.float32),
        grid_spec=pltpu.PrefetchScalarGridSpec(
            num_scalar_prefetch=0,
            grid=(n, grid_j),
            in_specs=[in_spec, in_spec],
            out_specs=pl.BlockSpec((1, out_rows, lanes), lambda i, j: (i, j, 0)),
        ),
        compiler_params=pltpu.CompilerParams(
            # Every grid cell owns its output block -> fully parallel
            # (shards across both TensorCores on v7x; neutral on v5e/v6e).
            dimension_semantics=("parallel", "parallel"),
            vmem_limit_bytes=vmem_limit,
        ),
    )(xo, xg)

    # Tiny final reduction + mean outside the kernel.
    return jnp.sum(parts) / total_elems


def _grad_loss_ref(output, gt_img):
    """Pure-JAX reference mirroring the PyTorch module (sanity check)."""
    def grad_layer(x):
        if x.shape[1] == 3:
            coeffs = jnp.asarray(_GRAY_COEFFS, jnp.float32).reshape(1, 3, 1, 1, 1)
            x = jnp.sum(x * coeffs, axis=1, keepdims=True)
        xp = jnp.pad(x, ((0, 0), (0, 0), (1, 1), (0, 0), (0, 0)))
        gv = xp[:, :, 2:, :, :] - xp[:, :, :-2, :, :]
        return jnp.sqrt(3.0 * gv * gv + _EPS)

    return jnp.mean(jnp.abs(grad_layer(output) - grad_layer(gt_img)))


if __name__ == "__main__":
    key = jax.random.PRNGKey(0)
    k1, k2, k3, k4, k5, k6 = jax.random.split(key, 6)

    # Case 1: 3-channel input (gray path), H*W a multiple of 128, rows < 8.
    shape1 = (2, 3, 4, 16, 16)
    out1 = jax.random.uniform(k1, shape1, dtype=jnp.float32)
    gt1 = jax.random.uniform(k2, shape1, dtype=jnp.float32)
    loss1 = grad_loss(out1, gt1)
    jax.block_until_ready(loss1)
    ref1 = _grad_loss_ref(out1, gt1)
    assert jnp.allclose(loss1, ref1, rtol=1e-5, atol=1e-6), (loss1, ref1)

    # Case 2: 1-channel input, H*W not a multiple of 128 (row-folded lane view).
    shape2 = (1, 1, 3, 8, 20)
    out2 = jax.random.uniform(k3, shape2, dtype=jnp.float32)
    gt2 = jax.random.uniform(k4, shape2, dtype=jnp.float32)
    loss2 = grad_loss(out2, gt2)
    jax.block_until_ready(loss2)
    ref2 = _grad_loss_ref(out2, gt2)
    assert jnp.allclose(loss2, ref2, rtol=1e-5, atol=1e-6), (loss2, ref2)

    # Case 3: exercises multi-tile grid, ragged last row-tile (in-kernel mask
    # over OOB rows) and the 8-row group reduce.
    shape3 = (1, 1, 3, 40, 64)
    out3 = jax.random.uniform(k5, shape3, dtype=jnp.float32)
    gt3 = jax.random.uniform(k6, shape3, dtype=jnp.float32)
    loss3 = grad_loss(out3, gt3)
    jax.block_until_ready(loss3)
    ref3 = _grad_loss_ref(out3, gt3)
    assert jnp.allclose(loss3, ref3, rtol=1e-5, atol=1e-6), (loss3, ref3)

    print("KERNEL_OK")
</pallas_src>

<mosaic_0001>
module attributes {stable_mosaic.version = 11 : i64} {
  func.func @_grad_loss_kernel(%arg0: i32, %arg1: i32, %arg2: memref<1x3x4x2x128xf32, #tpu.memory_space<vmem>>, %arg3: memref<1x3x4x2x128xf32, #tpu.memory_space<vmem>>, %arg4: memref<1x2x128xf32, #tpu.memory_space<vmem>>) attributes {dimension_semantics = [#tpu.dimension_semantics<parallel>, #tpu.dimension_semantics<parallel>], iteration_bounds = array<i64: 2, 1>, scalar_prefetch = 0 : i64, scratch_operands = 0 : i64, tpu.core_type = #tpu.core_type<tc>, window_params = [{transform_indices = @transform_0, window_bounds = array<i64: 1, 3, 4, 2, 128>}, {transform_indices = @transform_1, window_bounds = array<i64: 1, 3, 4, 2, 128>}, {transform_indices = @transform_2, window_bounds = array<i64: 1, 2, 128>}]} {
    %cst = arith.constant 0.000000e+00 : f32
    %0 = vector.broadcast %cst : f32 to vector<2x128xf32>
    %c0 = arith.constant 0 : index
    %c0_0 = arith.constant 0 : index
    %c0_1 = arith.constant 0 : index
    %c0_2 = arith.constant 0 : index
    %c0_3 = arith.constant 0 : index
    %1 = vector.load %arg2[%c0, %c0_0, %c0_1, %c0_2, %c0_3] : memref<1x3x4x2x128xf32, #tpu.memory_space<vmem>>, vector<1x1x1x2x128xf32>
    %2 = vector.shape_cast %1 : vector<1x1x1x2x128xf32> to vector<2x128xf32>
    %cst_4 = arith.constant 0.256789058 : f32
    %3 = vector.broadcast %cst_4 : f32 to vector<2x128xf32>
    %4 = arith.mulf %2, %3 : vector<2x128xf32>
    %c0_5 = arith.constant 0 : index
    %c1 = arith.constant 1 : index
    %c0_6 = arith.constant 0 : index
    %c0_7 = arith.constant 0 : index
    %c0_8 = arith.constant 0 : index
    %5 = vector.load %arg2[%c0_5, %c1, %c0_6, %c0_7, %c0_8] : memref<1x3x4x2x128xf32, #tpu.memory_space<vmem>>, vector<1x1x1x2x128xf32>
    %6 = vector.shape_cast %5 : vector<1x1x1x2x128xf32> to vector<2x128xf32>
    %cst_9 = arith.constant 0.504128933 : f32
    %7 = vector.broadcast %cst_9 : f32 to vector<2x128xf32>
    %8 = arith.mulf %6, %7 : vector<2x128xf32>
    %9 = arith.addf %4, %8 : vector<2x128xf32>
    %c0_10 = arith.constant 0 : index
    %c2 = arith.constant 2 : index
    %c0_11 = arith.constant 0 : index
    %c0_12 = arith.constant 0 : index
    %c0_13 = arith.constant 0 : index
    %10 = vector.load %arg2[%c0_10, %c2, %c0_11, %c0_12, %c0_13] : memref<1x3x4x2x128xf32, #tpu.memory_space<vmem>>, vector<1x1x1x2x128xf32>
    %11 = vector.shape_cast %10 : vector<1x1x1x2x128xf32> to vector<2x128xf32>
    %cst_14 = arith.constant 0.0979062467 : f32
    %12 = vector.broadcast %cst_14 : f32 to vector<2x128xf32>
    %13 = arith.mulf %11, %12 : vector<2x128xf32>
    %14 = arith.addf %9, %13 : vector<2x128xf32>
    %c0_15 = arith.constant 0 : index
    %c0_16 = arith.constant 0 : index
    %c0_17 = arith.constant 0 : index
    %c0_18 = arith.constant 0 : index
    %c0_19 = arith.constant 0 : index
    %15 = vector.load %arg3[%c0_15, %c0_16, %c0_17, %c0_18, %c0_19] : memref<1x3x4x2x128xf32, #tpu.memory_space<vmem>>, vector<1x1x1x2x128xf32>
    %16 = vector.shape_cast %15 : vector<1x1x1x2x128xf32> to vector<2x128xf32>
    %cst_20 = arith.constant 0.256789058 : f32
    %17 = vector.broadcast %cst_20 : f32 to vector<2x128xf32>
    %18 = arith.mulf %16, %17 : vector<2x128xf32>
    %c0_21 = arith.constant 0 : index
    %c1_22 = arith.constant 1 : index
    %c0_23 = arith.constant 0 : index
    %c0_24 = arith.constant 0 : index
    %c0_25 = arith.constant 0 : index
    %19 = vector.load %arg3[%c0_21, %c1_22, %c0_23, %c0_24, %c0_25] : memref<1x3x4x2x128xf32, #tpu.memory_space<vmem>>, vector<1x1x1x2x128xf32>
    %20 = vector.shape_cast %19 : vector<1x1x1x2x128xf32> to vector<2x128xf32>
    %cst_26 = arith.constant 0.504128933 : f32
    %21 = vector.broadcast %cst_26 : f32 to vector<2x128xf32>
    %22 = arith.mulf %20, %21 : vector<2x128xf32>
    %23 = arith.addf %18, %22 : vector<2x128xf32>
    %c0_27 = arith.constant 0 : index
    %c2_28 = arith.constant 2 : index
    %c0_29 = arith.constant 0 : index
    %c0_30 = arith.constant 0 : index
    %c0_31 = arith.constant 0 : index
    %24 = vector.load %arg3[%c0_27, %c2_28, %c0_29, %c0_30, %c0_31] : memref<1x3x4x2x128xf32, #tpu.memory_space<vmem>>, vector<1x1x1x2x128xf32>
    %25 = vector.shape_cast %24 : vector<1x1x1x2x128xf32> to vector<2x128xf32>
    %cst_32 = arith.constant 0.0979062467 : f32
    %26 = vector.broadcast %cst_32 : f32 to vector<2x128xf32>
    %27 = arith.mulf %25, %26 : vector<2x128xf32>
    %28 = arith.addf %23, %27 : vector<2x128xf32>
    %c0_33 = arith.constant 0 : index
    %c0_34 = arith.constant 0 : index
    %c1_35 = arith.constant 1 : index
    %c0_36 = arith.constant 0 : index
    %c0_37 = arith.constant 0 : index
    %29 = vector.load %arg2[%c0_33, %c0_34, %c1_35, %c0_36, %c0_37] : memref<1x3x4x2x128xf32, #tpu.memory_space<vmem>>, vector<1x1x1x2x128xf32>
    %30 = vector.shape_cast %29 : vector<1x1x1x2x128xf32> to vector<2x128xf32>
    %cst_38 = arith.constant 0.256789058 : f32
    %31 = vector.broadcast %cst_38 : f32 to vector<2x128xf32>
    %32 = arith.mulf %30, %31 : vector<2x128xf32>
    %c0_39 = arith.constant 0 : index
    %c1_40 = arith.constant 1 : index
    %c1_41 = arith.constant 1 : index
    %c0_42 = arith.constant 0 : index
    %c0_43 = arith.constant 0 : index
    %33 = vector.load %arg2[%c0_39, %c1_40, %c1_41, %c0_42, %c0_43] : memref<1x3x4x2x128xf32, #tpu.memory_space<vmem>>, vector<1x1x1x2x128xf32>
    %34 = vector.shape_cast %33 : vector<1x1x1x2x128xf32> to vector<2x128xf32>
    %cst_44 = arith.constant 0.504128933 : f32
    %35 = vector.broadcast %cst_44 : f32 to vector<2x128xf32>
    %36 = arith.mulf %34, %35 : vector<2x128xf32>
    %37 = arith.addf %32, %36 : vector<2x128xf32>
    %c0_45 = arith.constant 0 : index
    %c2_46 = arith.constant 2 : index
    %c1_47 = arith.constant 1 : index
    %c0_48 = arith.constant 0 : index
    %c0_49 = arith.constant 0 : index
    %38 = vector.load %arg2[%c0_45, %c2_46, %c1_47, %c0_48, %c0_49] : memref<1x3x4x2x128xf32, #tpu.memory_space<vmem>>, vector<1x1x1x2x128xf32>
    %39 = vector.shape_cast %38 : vector<1x1x1x2x128xf32> to vector<2x128xf32>
    %cst_50 = arith.constant 0.0979062467 : f32
    %40 = vector.broadcast %cst_50 : f32 to vector<2x128xf32>
    %41 = arith.mulf %39, %40 : vector<2x128xf32>
    %42 = arith.addf %37, %41 : vector<2x128xf32>
    %c0_51 = arith.constant 0 : index
    %c0_52 = arith.constant 0 : index
    %c1_53 = arith.constant 1 : index
    %c0_54 = arith.constant 0 : index
    %c0_55 = arith.constant 0 : index
    %43 = vector.load %arg3[%c0_51, %c0_52, %c1_53, %c0_54, %c0_55] : memref<1x3x4x2x128xf32, #tpu.memory_space<vmem>>, vector<1x1x1x2x128xf32>
    %44 = vector.shape_cast %43 : vector<1x1x1x2x128xf32> to vector<2x128xf32>
    %cst_56 = arith.constant 0.256789058 : f32
    %45 = vector.broadcast %cst_56 : f32 to vector<2x128xf32>
    %46 = arith.mulf %44, %45 : vector<2x128xf32>
    %c0_57 = arith.constant 0 : index
    %c1_58 = arith.constant 1 : index
    %c1_59 = arith.constant 1 : index
    %c0_60 = arith.constant 0 : index
    %c0_61 = arith.constant 0 : index
    %47 = vector.load %arg3[%c0_57, %c1_58, %c1_59, %c0_60, %c0_61] : memref<1x3x4x2x128xf32, #tpu.memory_space<vmem>>, vector<1x1x1x2x128xf32>
    %48 = vector.shape_cast %47 : vector<1x1x1x2x128xf32> to vector<2x128xf32>
    %cst_62 = arith.constant 0.504128933 : f32
    %49 = vector.broadcast %cst_62 : f32 to vector<2x128xf32>
    %50 = arith.mulf %48, %49 : vector<2x128xf32>
    %51 = arith.addf %46, %50 : vector<2x128xf32>
    %c0_63 = arith.constant 0 : index
    %c2_64 = arith.constant 2 : index
    %c1_65 = arith.constant 1 : index
    %c0_66 = arith.constant 0 : index
    %c0_67 = arith.constant 0 : index
    %52 = vector.load %arg3[%c0_63, %c2_64, %c1_65, %c0_66, %c0_67] : memref<1x3x4x2x128xf32, #tpu.memory_space<vmem>>, vector<1x1x1x2x128xf32>
    %53 = vector.shape_cast %52 : vector<1x1x1x2x128xf32> to vector<2x128xf32>
    %cst_68 = arith.constant 0.0979062467 : f32
    %54 = vector.broadcast %cst_68 : f32 to vector<2x128xf32>
    %55 = arith.mulf %53, %54 : vector<2x128xf32>
    %56 = arith.addf %51, %55 : vector<2x128xf32>
    %cst_69 = arith.constant 3.000000e+00 : f32
    %57 = vector.broadcast %cst_69 : f32 to vector<2x128xf32>
    %58 = arith.mulf %57, %42 : vector<2x128xf32>
    %59 = arith.mulf %58, %42 : vector<2x128xf32>
    %cst_70 = arith.constant 9.99999997E-7 : f32
    %60 = vector.broadcast %cst_70 : f32 to vector<2x128xf32>
    %61 = arith.addf %59, %60 : vector<2x128xf32>
    %62 = math.sqrt %61 : vector<2x128xf32>
    %cst_71 = arith.constant 3.000000e+00 : f32
    %63 = vector.broadcast %cst_71 : f32 to vector<2x128xf32>
    %64 = arith.mulf %63, %56 : vector<2x128xf32>
    %65 = arith.mulf %64, %56 : vector<2x128xf32>
    %cst_72 = arith.constant 9.99999997E-7 : f32
    %66 = vector.broadcast %cst_72 : f32 to vector<2x128xf32>
    %67 = arith.addf %65, %66 : vector<2x128xf32>
    %68 = math.sqrt %67 : vector<2x128xf32>
    %69 = arith.subf %62, %68 : vector<2x128xf32>
    %70 = math.absf %69 : vector<2x128xf32>
    %71 = arith.addf %0, %70 : vector<2x128xf32>
    %c0_73 = arith.constant 0 : index
    %c0_74 = arith.constant 0 : index
    %c2_75 = arith.constant 2 : index
    %c0_76 = arith.constant 0 : index
    %c0_77 = arith.constant 0 : index
    %72 = vector.load %arg2[%c0_73, %c0_74, %c2_75, %c0_76, %c0_77] : memref<1x3x4x2x128xf32, #tpu.memory_space<vmem>>, vector<1x1x1x2x128xf32>
    %73 = vector.shape_cast %72 : vector<1x1x1x2x128xf32> to vector<2x128xf32>
    %cst_78 = arith.constant 0.256789058 : f32
    %74 = vector.broadcast %cst_78 : f32 to vector<2x128xf32>
    %75 = arith.mulf %73, %74 : vector<2x128xf32>
    %c0_79 = arith.constant 0 : index
    %c1_80 = arith.constant 1 : index
    %c2_81 = arith.constant 2 : index
    %c0_82 = arith.constant 0 : index
    %c0_83 = arith.constant 0 : index
    %76 = vector.load %arg2[%c0_79, %c1_80, %c2_81, %c0_82, %c0_83] : memref<1x3x4x2x128xf32, #tpu.memory_space<vmem>>, vector<1x1x1x2x128xf32>
    %77 = vector.shape_cast %76 : vector<1x1x1x2x128xf32> to vector<2x128xf32>
    %cst_84 = arith.constant 0.504128933 : f32
    %78 = vector.broadcast %cst_84 : f32 to vector<2x128xf32>
    %79 = arith.mulf %77, %78 : vector<2x128xf32>
    %80 = arith.addf %75, %79 : vector<2x128xf32>
    %c0_85 = arith.constant 0 : index
    %c2_86 = arith.constant 2 : index
    %c2_87 = arith.constant 2 : index
    %c0_88 = arith.constant 0 : index
    %c0_89 = arith.constant 0 : index
    %81 = vector.load %arg2[%c0_85, %c2_86, %c2_87, %c0_88, %c0_89] : memref<1x3x4x2x128xf32, #tpu.memory_space<vmem>>, vector<1x1x1x2x128xf32>
    %82 = vector.shape_cast %81 : vector<1x1x1x2x128xf32> to vector<2x128xf32>
    %cst_90 = arith.constant 0.0979062467 : f32
    %83 = vector.broadcast %cst_90 : f32 to vector<2x128xf32>
    %84 = arith.mulf %82, %83 : vector<2x128xf32>
    %85 = arith.addf %80, %84 : vector<2x128xf32>
    %c0_91 = arith.constant 0 : index
    %c0_92 = arith.constant 0 : index
    %c2_93 = arith.constant 2 : index
    %c0_94 = arith.constant 0 : index
    %c0_95 = arith.constant 0 : index
    %86 = vector.load %arg3[%c0_91, %c0_92, %c2_93, %c0_94, %c0_95] : memref<1x3x4x2x128xf32, #tpu.memory_space<vmem>>, vector<1x1x1x2x128xf32>
    %87 = vector.shape_cast %86 : vector<1x1x1x2x128xf32> to vector<2x128xf32>
    %cst_96 = arith.constant 0.256789058 : f32
    %88 = vector.broadcast %cst_96 : f32 to vector<2x128xf32>
    %89 = arith.mulf %87, %88 : vector<2x128xf32>
    %c0_97 = arith.constant 0 : index
    %c1_98 = arith.constant 1 : index
    %c2_99 = arith.constant 2 : index
    %c0_100 = arith.constant 0 : index
    %c0_101 = arith.constant 0 : index
    %90 = vector.load %arg3[%c0_97, %c1_98, %c2_99, %c0_100, %c0_101] : memref<1x3x4x2x128xf32, #tpu.memory_space<vmem>>, vector<1x1x1x2x128xf32>
    %91 = vector.shape_cast %90 : vector<1x1x1x2x128xf32> to vector<2x128xf32>
    %cst_102 = arith.constant 0.504128933 : f32
    %92 = vector.broadcast %cst_102 : f32 to vector<2x128xf32>
    %93 = arith.mulf %91, %92 : vector<2x128xf32>
    %94 = arith.addf %89, %93 : vector<2x128xf32>
    %c0_103 = arith.constant 0 : index
    %c2_104 = arith.constant 2 : index
    %c2_105 = arith.constant 2 : index
    %c0_106 = arith.constant 0 : index
    %c0_107 = arith.constant 0 : index
    %95 = vector.load %arg3[%c0_103, %c2_104, %c2_105, %c0_106, %c0_107] : memref<1x3x4x2x128xf32, #tpu.memory_space<vmem>>, vector<1x1x1x2x128xf32>
    %96 = vector.shape_cast %95 : vector<1x1x1x2x128xf32> to vector<2x128xf32>
    %cst_108 = arith.constant 0.0979062467 : f32
    %97 = vector.broadcast %cst_108 : f32 to vector<2x128xf32>
    %98 = arith.mulf %96, %97 : vector<2x128xf32>
    %99 = arith.addf %94, %98 : vector<2x128xf32>
    %100 = arith.subf %85, %14 : vector<2x128xf32>
    %101 = arith.subf %99, %28 : vector<2x128xf32>
    %cst_109 = arith.constant 3.000000e+00 : f32
    %102 = vector.broadcast %cst_109 : f32 to vector<2x128xf32>
    %103 = arith.mulf %102, %100 : vector<2x128xf32>
    %104 = arith.mulf %103, %100 : vector<2x128xf32>
    %cst_110 = arith.constant 9.99999997E-7 : f32
    %105 = vector.broadcast %cst_110 : f32 to vector<2x128xf32>
    %106 = arith.addf %104, %105 : vector<2x128xf32>
    %107 = math.sqrt %106 : vector<2x128xf32>
    %cst_111 = arith.constant 3.000000e+00 : f32
    %108 = vector.broadcast %cst_111 : f32 to vector<2x128xf32>
    %109 = arith.mulf %108, %101 : vector<2x128xf32>
    %110 = arith.mulf %109, %101 : vector<2x128xf32>
    %cst_112 = arith.constant 9.99999997E-7 : f32
    %111 = vector.broadcast %cst_112 : f32 to vector<2x128xf32>
    %112 = arith.addf %110, %111 : vector<2x128xf32>
    %113 = math.sqrt %112 : vector<2x128xf32>
    %114 = arith.subf %107, %113 : vector<2x128xf32>
    %115 = math.absf %114 : vector<2x128xf32>
    %116 = arith.addf %71, %115 : vector<2x128xf32>
    %c0_113 = arith.constant 0 : index
    %c0_114 = arith.constant 0 : index
    %c3 = arith.constant 3 : index
    %c0_115 = arith.constant 0 : index
    %c0_116 = arith.constant 0 : index
    %117 = vector.load %arg2[%c0_113, %c0_114, %c3, %c0_115, %c0_116] : memref<1x3x4x2x128xf32, #tpu.memory_space<vmem>>, vector<1x1x1x2x128xf32>
    %118 = vector.shape_cast %117 : vector<1x1x1x2x128xf32> to vector<2x128xf32>
    %cst_117 = arith.constant 0.256789058 : f32
    %119 = vector.broadcast %cst_117 : f32 to vector<2x128xf32>
    %120 = arith.mulf %118, %119 : vector<2x128xf32>
    %c0_118 = arith.constant 0 : index
    %c1_119 = arith.constant 1 : index
    %c3_120 = arith.constant 3 : index
    %c0_121 = arith.constant 0 : index
    %c0_122 = arith.constant 0 : index
    %121 = vector.load %arg2[%c0_118, %c1_119, %c3_120, %c0_121, %c0_122] : memref<1x3x4x2x128xf32, #tpu.memory_space<vmem>>, vector<1x1x1x2x128xf32>
    %122 = vector.shape_cast %121 : vector<1x1x1x2x128xf32> to vector<2x128xf32>
    %cst_123 = arith.constant 0.504128933 : f32
    %123 = vector.broadcast %cst_123 : f32 to vector<2x128xf32>
    %124 = arith.mulf %122, %123 : vector<2x128xf32>
    %125 = arith.addf %120, %124 : vector<2x128xf32>
    %c0_124 = arith.constant 0 : index
    %c2_125 = arith.constant 2 : index
    %c3_126 = arith.constant 3 : index
    %c0_127 = arith.constant 0 : index
    %c0_128 = arith.constant 0 : index
    %126 = vector.load %arg2[%c0_124, %c2_125, %c3_126, %c0_127, %c0_128] : memref<1x3x4x2x128xf32, #tpu.memory_space<vmem>>, vector<1x1x1x2x128xf32>
    %127 = vector.shape_cast %126 : vector<1x1x1x2x128xf32> to vector<2x128xf32>
    %cst_129 = arith.constant 0.0979062467 : f32
    %128 = vector.broadcast %cst_129 : f32 to vector<2x128xf32>
    %129 = arith.mulf %127, %128 : vector<2x128xf32>
    %130 = arith.addf %125, %129 : vector<2x128xf32>
    %c0_130 = arith.constant 0 : index
    %c0_131 = arith.constant 0 : index
    %c3_132 = arith.constant 3 : index
    %c0_133 = arith.constant 0 : index
    %c0_134 = arith.constant 0 : index
    %131 = vector.load %arg3[%c0_130, %c0_131, %c3_132, %c0_133, %c0_134] : memref<1x3x4x2x128xf32, #tpu.memory_space<vmem>>, vector<1x1x1x2x128xf32>
    %132 = vector.shape_cast %131 : vector<1x1x1x2x128xf32> to vector<2x128xf32>
    %cst_135 = arith.constant 0.256789058 : f32
    %133 = vector.broadcast %cst_135 : f32 to vector<2x128xf32>
    %134 = arith.mulf %132, %133 : vector<2x128xf32>
    %c0_136 = arith.constant 0 : index
    %c1_137 = arith.constant 1 : index
    %c3_138 = arith.constant 3 : index
    %c0_139 = arith.constant 0 : index
    %c0_140 = arith.constant 0 : index
    %135 = vector.load %arg3[%c0_136, %c1_137, %c3_138, %c0_139, %c0_140] : memref<1x3x4x2x128xf32, #tpu.memory_space<vmem>>, vector<1x1x1x2x128xf32>
    %136 = vector.shape_cast %135 : vector<1x1x1x2x128xf32> to vector<2x128xf32>
    %cst_141 = arith.constant 0.504128933 : f32
    %137 = vector.broadcast %cst_141 : f32 to vector<2x128xf32>
    %138 = arith.mulf %136, %137 : vector<2x128xf32>
    %139 = arith.addf %134, %138 : vector<2x128xf32>
    %c0_142 = arith.constant 0 : index
    %c2_143 = arith.constant 2 : index
    %c3_144 = arith.constant 3 : index
    %c0_145 = arith.constant 0 : index
    %c0_146 = arith.constant 0 : index
    %140 = vector.load %arg3[%c0_142, %c2_143, %c3_144, %c0_145, %c0_146] : memref<1x3x4x2x128xf32, #tpu.memory_space<vmem>>, vector<1x1x1x2x128xf32>
    %141 = vector.shape_cast %140 : vector<1x1x1x2x128xf32> to vector<2x128xf32>
    %cst_147 = arith.constant 0.0979062467 : f32
    %142 = vector.broadcast %cst_147 : f32 to vector<2x128xf32>
    %143 = arith.mulf %141, %142 : vector<2x128xf32>
    %144 = arith.addf %139, %143 : vector<2x128xf32>
    %145 = arith.subf %130, %42 : vector<2x128xf32>
    %146 = arith.subf %144, %56 : vector<2x128xf32>
    %cst_148 = arith.constant 3.000000e+00 : f32
    %147 = vector.broadcast %cst_148 : f32 to vector<2x128xf32>
    %148 = arith.mulf %147, %145 : vector<2x128xf32>
    %149 = arith.mulf %148, %145 : vector<2x128xf32>
    %cst_149 = arith.constant 9.99999997E-7 : f32
    %150 = vector.broadcast %cst_149 : f32 to vector<2x128xf32>
    %151 = arith.addf %149, %150 : vector<2x128xf32>
    %152 = math.sqrt %151 : vector<2x128xf32>
    %cst_150 = arith.constant 3.000000e+00 : f32
    %153 = vector.broadcast %cst_150 : f32 to vector<2x128xf32>
    %154 = arith.mulf %153, %146 : vector<2x128xf32>
    %155 = arith.mulf %154, %146 : vector<2x128xf32>
    %cst_151 = arith.constant 9.99999997E-7 : f32
    %156 = vector.broadcast %cst_151 : f32 to vector<2x128xf32>
    %157 = arith.addf %155, %156 : vector<2x128xf32>
    %158 = math.sqrt %157 : vector<2x128xf32>
    %159 = arith.subf %152, %158 : vector<2x128xf32>
    %160 = math.absf %159 : vector<2x128xf32>
    %161 = arith.addf %116, %160 : vector<2x128xf32>
    %cst_152 = arith.constant 3.000000e+00 : f32
    %162 = vector.broadcast %cst_152 : f32 to vector<2x128xf32>
    %163 = arith.mulf %162, %85 : vector<2x128xf32>
    %164 = arith.mulf %163, %85 : vector<2x128xf32>
    %cst_153 = arith.constant 9.99999997E-7 : f32
    %165 = vector.broadcast %cst_153 : f32 to vector<2x128xf32>
    %166 = arith.addf %164, %165 : vector<2x128xf32>
    %167 = math.sqrt %166 : vector<2x128xf32>
    %cst_154 = arith.constant 3.000000e+00 : f32
    %168 = vector.broadcast %cst_154 : f32 to vector<2x128xf32>
    %169 = arith.mulf %168, %99 : vector<2x128xf32>
    %170 = arith.mulf %169, %99 : vector<2x128xf32>
    %cst_155 = arith.constant 9.99999997E-7 : f32
    %171 = vector.broadcast %cst_155 : f32 to vector<2x128xf32>
    %172 = arith.addf %170, %171 : vector<2x128xf32>
    %173 = math.sqrt %172 : vector<2x128xf32>
    %174 = arith.subf %167, %173 : vector<2x128xf32>
    %175 = math.absf %174 : vector<2x128xf32>
    %176 = arith.addf %161, %175 : vector<2x128xf32>
    %177 = vector.shape_cast %176 : vector<2x128xf32> to vector<1x2x128xf32>
    %c0_156 = arith.constant 0 : index
    %c0_157 = arith.constant 0 : index
    %c0_158 = arith.constant 0 : index
    %178 = vector.load %arg4[%c0_156, %c0_157, %c0_158] : memref<1x2x128xf32, #tpu.memory_space<vmem>>, vector<1x2x128xf32>
    tpu.vector_store %arg4[%c0_156, %c0_157, %c0_158], %177 {strides = array<i32>} : memref<1x2x128xf32, #tpu.memory_space<vmem>>, vector<1x2x128xf32>,
    return
  }
  func.func @transform_0(%arg0: i32, %arg1: i32) -> (i32, i32, i32, i32, i32) {
    %c0_i32 = arith.constant 0 : i32
    %c0_i32_0 = arith.constant 0 : i32
    %c0_i32_1 = arith.constant 0 : i32
    %c0_i32_2 = arith.constant 0 : i32
    return %arg0, %c0_i32, %c0_i32_0, %arg1, %c0_i32_1 : i32, i32, i32, i32, i32
  }
  func.func @transform_1(%arg0: i32, %arg1: i32) -> (i32, i32, i32, i32, i32) {
    %c0_i32 = arith.constant 0 : i32
    %c0_i32_0 = arith.constant 0 : i32
    %c0_i32_1 = arith.constant 0 : i32
    %c0_i32_2 = arith.constant 0 : i32
    return %arg0, %c0_i32, %c0_i32_0, %arg1, %c0_i32_1 : i32, i32, i32, i32, i32
  }
  func.func @transform_2(%arg0: i32, %arg1: i32) -> (i32, i32, i32) {
    %c0_i32 = arith.constant 0 : i32
    %c0_i32_0 = arith.constant 0 : i32
    return %arg0, %arg1, %c0_i32 : i32, i32, i32
  }
}

</mosaic_0001>

<bundles_post_ra>
// kernel: tpu_custom_call.1
= control target key start
LH: loop header
LB: loop body
LE: loop exit
PB: predicated region body
PF: predicated region fallthrough
CT: control target
= control target key end

     0   :  { %7 = vsyncpa [#allocation3], 0  ;;  %s1125_s0 = inlined_call_operand.hbm [shape: f32[2,3,4,2,128], index: 0, kind: input, shape index: {}]   ;;  %s1126_s1 = inlined_call_operand.hbm [shape: f32[2,3,4,2,128], index: 1, kind: input, shape index: {}]   ;;  %s1127_s2 = inlined_call_operand.hbm [shape: f32[2,2,128], index: 2, kind: output, shape index: {}]  }
   0x1   :  { %9 = vsyncpa [#allocation3 + $0x1], 0 }
   0x2   :  { %10 = vsyncpa [#allocation6], 0 }
   0x3   :  { %12 = vsyncpa [#allocation6 + $0x1], 0 }
   0x4   :  { %13 = vsyncpa [#allocation4], 0 }
   0x5   :  { %15 = vsyncpa [#allocation4 + $0x1], 0  ;;  %s818_s9 = smov 0   ;;  %s820_s10 = smov 0  }
   0x6   :  { %s822_s11 = smov 0   ;;  %s824_s12 = smov 0  }
   0x7   :  { %s826_s13 = smov 0   ;;  %s828_s14 = smov 0  }
   0x8 LB: > { %s526_s15 = sadd.s32 4294967295, %s796_s14   ;;  %s527_s16 = sadd.s32 4294967294, %s796_s14   ;;  %s796_s14 = sphi %s828_s14, %s21_s14   ;;  %s792_s13 = sphi %s826_s13, %s1145_s13   ;;  %s788_s12 = sphi %s824_s12, %s1144_s12   ;;  %s784_s11 = sphi %s822_s11, %s1143_s11   ;;  %s780_s10 = sphi %s820_s10, %s1142_s10   ;;  %s776_s9 = sphi %s818_s9, %s1141_s9  }
   0x9   : > { %s33_s17 = sadd.s32 1, %s792_s13  ;;  %s42_s18 = sadd.s32 1, %s784_s11 }
   0xa   : > { %p35_p0 = scmp.ge.s32.totalorder %s33_s17, 2  ;;  %p49_p1 = scmp.ne.s32.totalorder %s784_s11, %s780_s10 }
   0xb   : > { %p50_p2 = scmp.eq.s32.totalorder %s796_s14, 0  ;;  %p55_p3 = scmp.ne.s32.totalorder %s780_s10, %s776_s9 }
   0xc   : > { %s1147_s17 = smov (%p35_p0, %s33_s17), 0  ;;  %p56_p5 = scmp.eq.s32.totalorder %s526_s15, 0 }
   0xd   : > { %p859_p4 = por %p50_p2, %p49_p1  ;;  %s37_s20 = ssub.s32 %s792_s13, %s1147_s17 }
   0xe   : > { %p109_p6 = scmp.eq.s32.totalorder %s526_s15, 1  ;;  %p40_p7 = scmp.eq.s32.totalorder %s37_s20, 0 }
   0xf   : > { %p865_p8 = por %p56_p5, %p55_p3  ;;  %p115_p10 = scmp.eq.s32.totalorder %s527_s16, 1 }
  0x10   : > { %p869_p9 = por %p109_p6, %p49_p1  ;;  %p582_p13 = scmp.lt.s32.totalorder %s796_s14, 2 }
  0x11   : > { %s1131_s21 = scalar_select %p865_p8, 1, 0 }
  0x12   : > { %s1132_s22 = scalar_select %p869_p9, 1, 0 }
  0x13   : > { %s874_s23 = scalar_select %p40_p7, %s784_s11, %s42_s18  }
  0x14   : > { %p876_p11 = por %p115_p10, %p55_p3  ;;  %s883_s25 = sand.u32 1, %s784_s11  }
  0x15   : > { %s560_s26 = smul.u32 24, %s883_s25  ;;  %p889_p0 = pnand %p582_p13, %p859_p4 }
  0x16   : > { %s1133_s24 = scalar_select %p876_p11, 1, 0 }
  0x17   : > { %s561_s27 = smul.u32 384, %s792_s13  ;;  %s139_s4 = scalar_lea.vmem [#allocation2], %s560_s26 }
  0x18   : > { %s147_s5 = sshll.u32 %s139_s4, 4  ;;  %s136_s6 = scalar_lea.sflag [#allocation3], %s883_s25  ;;  %s902_s5 = int_to_ptr.vmem [resolvable:$true] %s147_s5 }
  0x19   : > { %s898_s3 = scalar_lea.hbm %s1125_s0, %s561_s27  ;;  %p652_p3 = pneg %p889_p0 }
  0x1a   : > { %s650_s7 = scalar_lea.hbm %s898_s3, 384  ;;  %s655_s16 = scalar_lea.hbm %s1125_s0, 768 }
  0x1b   : > { %p651_p2 = scmp.ne.s32.totalorder %s898_s3, %s650_s7  ;;  %p656_p6 = scmp.lt.u32.totalorder %s898_s3, %s1125_s0 }
  0x1c   : > { %p657_p7 = scmp.lt.u32.totalorder %s655_s16, %s650_s7  ;;  %p659_p13 = scmp.lt.u32.totalorder %s650_s7, %s898_s3 }
  0x1d   : > { %p653_p4 = pnand %p652_p3, %p651_p2 }
  0x1e   : > { %p658_p10 = por %p657_p7, %p656_p6 }
  0x1f   : > { %p654_p5 = pneg %p653_p4 }
  0x20   : > { %p660_p12 = por %p659_p13, %p658_p10 }
  0x22   : > { %p661_p1 = pnand %p660_p12, %p654_p5 }
  0x24   : > { %664 = shalt.err (!%p661_p1)
}
  0x25   : > { %s665_s20 = scalar_lea.vmem %s902_s5, 384  ;;  %s798_s29 = smov [#allocation2]  }
  0x26   : > { %p666_p2 = scmp.ne.s32.totalorder %s902_s5, %s665_s20  ;;  %s670_s30 = sshll.u32 %s798_s29, 4  ;;  %s671_s30 = int_to_ptr.vmem [resolvable:$false] %s670_s30 }
  0x27   : > { %s672_s4 = scalar_lea.vmem %s671_s30, 768  ;;  %p673_p9 = scmp.lt.s32.totalorder %s902_s5, %s671_s30 }
  0x28   : > { %p668_p4 = pnand %p666_p2, %p652_p3  ;;  %p674_p6 = scmp.lt.s32.totalorder %s672_s4, %s665_s20 }
  0x2a   : > { %p669_p11 = pneg %p668_p4  ;;  %p675_p7 = por %p674_p6, %p673_p9 }
  0x2c   : > { %p676_p10 = pnand %p675_p7, %p669_p11 }
  0x2e   : > { %679 = shalt.err (!%p676_p10)
}
  0x2f   : > { %s799_s7 = smov 32   ;;  %s800_s8 = smov 2  }
  0x30   : > { %574 = dma.hbm_to_vmem [thread:$0]  (!%p889_p0), %s898_s3, 384, %s902_s5, %s136_s6, %s799_s7, %s799_s7, %s800_s8  }
  0x31   : > { %p177_p9 = scmp.lt.s32.totalorder %s796_s14, 3  ;;  %s942_s18 = scalar_lea.hbm %s1126_s1, %s561_s27 }
  0x32   : > { %p1135_p11 = scmp.ge.s32.totalorder %s796_s14, 1  ;;  %s161_s20 = scalar_lea.vmem [#allocation5], %s560_s26 }
  0x33   : > { %s169_s29 = sshll.u32 %s161_s20, 4  ;;  %s158_s3 = scalar_lea.sflag [#allocation6], %s883_s25  ;;  %s952_s29 = int_to_ptr.vmem [resolvable:$true] %s169_s29 }
  0x34   : > { %p946_p12 = pnand %p1135_p11, %p177_p9  ;;  %s680_s5 = scalar_lea.hbm %s942_s18, 384 }
  0x35   : > { %p681_p1 = scmp.ne.s32.totalorder %s942_s18, %s680_s5  ;;  %s685_s30 = scalar_lea.hbm %s1126_s1, 768 }
  0x36   : > { %p686_p2 = scmp.lt.u32.totalorder %s942_s18, %s1126_s1  ;;  %p687_p4 = scmp.lt.u32.totalorder %s685_s30, %s680_s5 }
  0x37   : > { %p683_p5 = pnand %p681_p1, %p652_p3  ;;  %p689_p7 = scmp.lt.u32.totalorder %s680_s5, %s942_s18 }
  0x38   : > { %p688_p6 = por %p687_p4, %p686_p2 }
  0x39   : > { %p684_p13 = pneg %p683_p5 }
  0x3a   : > { %p690_p10 = por %p689_p7, %p688_p6 }
  0x3c   : > { %p691_p9 = pnand %p690_p10, %p684_p13 }
  0x3e   : > { %694 = shalt.err (!%p691_p9)
}
  0x3f   : > { %s695_s26 = scalar_lea.vmem %s952_s29, 384  ;;  %s801_s16 = smov [#allocation5]  }
  0x40   : > { %p696_p11 = scmp.ne.s32.totalorder %s952_s29, %s695_s26  ;;  %s700_s20 = sshll.u32 %s801_s16, 4  ;;  %s701_s20 = int_to_ptr.vmem [resolvable:$false] %s700_s20 }
  0x41   : > { %s702_s27 = scalar_lea.vmem %s701_s20, 768  ;;  %p703_p8 = scmp.lt.s32.totalorder %s952_s29, %s701_s20 }
  0x42   : > { %p698_p1 = pnand %p696_p11, %p652_p3  ;;  %p704_p2 = scmp.lt.s32.totalorder %s702_s27, %s695_s26 }
  0x44   : > { %p699_p5 = pneg %p698_p1  ;;  %p705_p4 = por %p704_p2, %p703_p8 }
  0x46   : > { %p706_p6 = pnand %p705_p4, %p699_p5 }
  0x48   : > { %709 = shalt.err (!%p706_p6)
}
  0x49   : > { %577 = dma.hbm_to_vmem [thread:$0]  (!%p889_p0), %s942_s18, 384, %s952_s29, %s158_s3, %s799_s7, %s799_s7, %s800_s8  }
  0x4a   : > { %181 = sbr.rel (%p946_p12) target bundleno = 151 (0x97), region = 28  ;;  %s986_s5 = sand.u32 (!%p946_p12), 1, %s780_s10  }
  0x4b   : > { %s564_s6 = smul.u32 (!%p946_p12), 24, %s986_s5  ;;  %s184_s30 = scalar_lea.sflag (!%p946_p12), [#allocation3], %s986_s5 }
  0x4c   : > { %p1137_p8 = scmp.ne.s32.totalorder (!%p946_p12), %s1131_s21, 0 }
  0x4d   : > { %s990_s28 = scalar_lea.vmem (!%p946_p12), [#allocation2], %s564_s6 }
  0x51   : > { %763 = dma.done.wait (%p1137_p8), %s184_s30, 384  }
  0x52   : > { %765 = vsyncadd (%p1137_p8), %s184_s30, 4294966912  ;;  %s193_s25 = scalar_lea.sflag [#allocation6], %s986_s5  ;;  %s997_s7 = scalar_lea.vmem [#allocation5], %s564_s6 }
  0x53   : > { %767 = dma.done.wait (%p1137_p8), %s193_s25, 384  }
  0x54   : > { %769 = vsyncadd (%p1137_p8), %s193_s25, 4294966912  ;;  %v222_v0 = vld [vmem:[%s990_s28] sm:$0x3]  ;;  %v534_v1 = vld [vmem:[%s990_s28 + $0x8] sm:$0x3]  ;;  %s533_s21 = sshll.u32 %s986_s5, 1 }
  0x55   : > { %v535_v2 = vld [vmem:[%s990_s28 + $0x10] sm:$0x3]  ;;  %v223_v3 = vmul.f32 0.25678906, %v222_v0  ;;  %v226_v4 = vmul.f32 0.50412893, %v534_v1 }
  0x56   : > { %v230_v5 = vmul.f32 0.09790625, %v535_v2  ;;  %v232_v6 = vld [vmem:[%s997_s7] sm:$0x3]  ;;  %v536_v7 = vld [vmem:[%s997_s7 + $0x8] sm:$0x3] }
  0x57   : > { %v537_v8 = vld [vmem:[%s997_s7 + $0x10] sm:$0x3]  ;;  %v233_v9 = vmul.f32 0.25678906, %v232_v6  ;;  %v236_v10 = vmul.f32 0.50412893, %v536_v7  ;;  %v227_v18 = vadd.f32 %v226_v4, %v223_v3 }
  0x58   : > { %v240_v11 = vmul.f32 0.09790625, %v537_v8  ;;  %v538_v12 = vld [vmem:[%s990_s28 + $0x2] sm:$0x3]  ;;  %v539_v13 = vld [vmem:[%s990_s28 + $0xa] sm:$0x3] }
  0x59   : > { %v540_v14 = vld [vmem:[%s990_s28 + $0x12] sm:$0x3]  ;;  %v244_v15 = vmul.f32 0.25678906, %v538_v12  ;;  %v247_v16 = vmul.f32 0.50412893, %v539_v13  ;;  %v231_v34 = vadd.f32 %v230_v5, %v227_v18  ;;  %v237_v35 = vadd.f32 %v236_v10, %v233_v9 }
  0x5a   : > { %v541_v17 = vld [vmem:[%s997_s7 + $0x2] sm:$0x3]  ;;  %v251_v19 = vmul.f32 0.09790625, %v540_v14  ;;  %v542_v21 = vld [vmem:[%s997_s7 + $0xa] sm:$0x3] }
  0x5b   : > { %v255_v20 = vmul.f32 0.25678906, %v541_v17  ;;  %v248_v22 = vadd.f32 %v247_v16, %v244_v15  ;;  %v258_v23 = vmul.f32 0.50412893, %v542_v21  ;;  %v543_v24 = vld [vmem:[%s997_s7 + $0x12] sm:$0x3]  ;;  %v241_v53 = vadd.f32 %v240_v11, %v237_v35 }
  0x5c   : > { %v544_v25 = vld [vmem:[%s990_s28 + $0x4] sm:$0x3]  ;;  %v262_v26 = vmul.f32 0.09790625, %v543_v24  ;;  %v545_v28 = vld [vmem:[%s990_s28 + $0xc] sm:$0x3] }
  0x5d   : > { %v289_v27 = vmul.f32 0.25678906, %v544_v25  ;;  %v252_v29 = vadd.f32 %v251_v19, %v248_v22  ;;  %v259_v30 = vadd.f32 %v258_v23, %v255_v20  ;;  %v292_v31 = vmul.f32 0.50412893, %v545_v28  ;;  %v546_v32 = vld [vmem:[%s990_s28 + $0x14] sm:$0x3] }
  0x5e   : > { %v547_v33 = vld [vmem:[%s997_s7 + $0x4] sm:$0x3]  ;;  %v296_v36 = vmul.f32 0.09790625, %v546_v32  ;;  %v548_v38 = vld [vmem:[%s997_s7 + $0xc] sm:$0x3] }
  0x5f   : > { %v300_v37 = vmul.f32 0.25678906, %v547_v33  ;;  %v263_v39 = vadd.f32 %v262_v26, %v259_v30  ;;  %v264_v40 = vmul.f32 3.0, %v252_v29  ;;  %v293_v41 = vadd.f32 %v292_v31, %v289_v27  ;;  %v549_v43 = vld [vmem:[%s997_s7 + $0x14] sm:$0x3]  ;;  %s221_s8 = scalar_lea.vmem [#allocation7], %s533_s21 }
  0x60   : > { %v303_v42 = vmul.f32 0.50412893, %v548_v38  ;;  %v307_v44 = vmul.f32 0.09790625, %v549_v43  ;;  %v550_v45 = vld [vmem:[%s990_s28 + $0x6] sm:$0x3] }
  0x61   : > { %v551_v46 = vld [vmem:[%s990_s28 + $0xe] sm:$0x3]  ;;  %v265_v47 = vmul.f32 %v264_v40, %v252_v29  ;;  %v274_v48 = vmul.f32 3.0, %v263_v39  ;;  %v297_v49 = vadd.f32 %v296_v36, %v293_v41  ;;  %v552_v51 = vld [vmem:[%s990_s28 + $0x16] sm:$0x3]  ;;  %s420_s18 = sshll.u32 %s221_s8, 4  ;;  %s1073_s18 = int_to_ptr.vmem [resolvable:$true] %s420_s18 }
  0x62   : > { %v304_v50 = vadd.f32 %v303_v42, %v300_v37  ;;  %v553_v52 = vld [vmem:[%s997_s7 + $0x6] sm:$0x3]  ;;  %v336_v54 = vmul.f32 0.25678906, %v550_v45  ;;  %v339_v55 = vmul.f32 0.50412893, %v551_v46 }
  0x63   : > { %v343_v56 = vmul.f32 0.09790625, %v552_v51  ;;  %v1025_v57 = vadd.f32 1e-06, %v265_v47  ;;  %v275_v58 = vmul.f32 %v274_v48, %v263_v39  ;;  %v309_v60 = vsub.f32 %v297_v49, %v231_v34  ;;  %v554_v61 = vld [vmem:[%s997_s7 + $0xe] sm:$0x3] }
  0x64   : > { %v308_v59 = vadd.f32 %v307_v44, %v304_v50  ;;  %v555_v62 = vld [vmem:[%s997_s7 + $0x16] sm:$0x3]  ;;  %v340_v63 = vadd.f32 %v339_v55, %v336_v54  ;;  %v347_v0 = vmul.f32 0.25678906, %v553_v52  ;;  %v350_v1 = vmul.f32 0.50412893, %v554_v61 }
  0x65   : > { %634 = vrsqrt.f32 %v1025_v57  ;;  %v354_v2 = vmul.f32 0.09790625, %v555_v62  ;;  %v276_v3 = vadd.f32 1e-06, %v275_v58  ;;  %v311_v5 = vmul.f32 3.0, %v309_v60  ;;  %s557_s19 = sshll.u32 %s788_s12, 5 }
  0x66   : > { %v310_v4 = vsub.f32 %v308_v59, %v241_v53  ;;  %v344_v6 = vadd.f32 %v343_v56, %v340_v63  ;;  %v351_v7 = vadd.f32 %v350_v1, %v347_v0  ;;  %v381_v8 = vmul.f32 3.0, %v297_v49  ;;  %s1078_s4 = scalar_lea.hbm %s1127_s2, %s557_s19  ;;  %s406_s15 = scalar_lea.sflag [#allocation4], %s986_s5 }
  0x67   : > { %v391_v9 = vmul.f32 3.0, %v308_v59  ;;  %636 = vrsqrt.f32 %v276_v3  ;;  %v312_v10 = vmul.f32 %v311_v5, %v309_v60  ;;  %vm269_vm0 = vcmp.eq.f32.partialorder %v1025_v57, inf  ;;  %s710_s26 = scalar_lea.vmem %s1073_s18, 32  ;;  %p1138_p3 = scmp.ne.s32.totalorder %s1132_s22, 0 }
  0x68   : > { %v321_v11 = vmul.f32 3.0, %v310_v4  ;;  %v355_v12 = vadd.f32 %v354_v2, %v351_v7  ;;  %v356_v13 = vsub.f32 %v344_v6, %v252_v29  ;;  %v382_v14 = vmul.f32 %v381_v8, %v297_v49  ;;  %p711_p0 = scmp.ne.s32.totalorder %s1073_s18, %s710_s26  ;;  %s802_s12 = smov [#allocation7]  }
  0x69   : > { %v392_v15 = vmul.f32 %v391_v9, %v308_v59  ;;  %v313_v16 = vadd.f32 1e-06, %v312_v10  ;;  %vm279_vm1 = vcmp.eq.f32.partialorder %v276_v3, inf  ;;  %vm271_vm2 = vcmp.eq.f32.partialorder %v1025_v57, 0.0  ;;  %s714_s16 = sshll.u32 %s802_s12, 4  ;;  %s715_s16 = int_to_ptr.vmem [resolvable:$false] %s714_s16 }
  0x6a   : > { %v322_v17 = vmul.f32 %v321_v11, %v310_v4  ;;  %v357_v18 = vsub.f32 %v355_v12, %v263_v39  ;;  %v358_v19 = vmul.f32 3.0, %v356_v13  ;;  %v1030_v20 = vadd.f32 1e-06, %v382_v14  ;;  %p712_p12 = pnand %p711_p0, %p1138_p3  ;;  %s716_s20 = scalar_lea.vmem %s715_s16, 64 }
  0x6b   : > { %v1032_v21 = vadd.f32 1e-06, %v392_v15  ;;  %638 = vrsqrt.f32 %v313_v16  ;;  %v272_v32 = vand.u32 2147483648, %v1025_v57  ;;  %v282_v33 = vand.u32 2147483648, %v276_v3  ;;  %p717_p7 = scmp.lt.s32.totalorder %s1073_s18, %s715_s16  ;;  %p718_p10 = scmp.lt.s32.totalorder %s716_s20, %s710_s26 }
  0x6c   : > { %v323_v22 = vadd.f32 1e-06, %v322_v17  ;;  %v359_v23 = vmul.f32 %v358_v19, %v356_v13  ;;  %v368_v24 = vmul.f32 3.0, %v357_v18  ;;  %640 = vrsqrt.f32 %v1030_v20  ;;  %p713_p13 = pneg %p712_p12 }
  0x6d   : > { %642 = vrsqrt.f32 %v1032_v21  ;;  %vm281_vm3 = vcmp.eq.f32.partialorder %v276_v3, 0.0  ;;  %vm316_vm4 = vcmp.eq.f32.partialorder %v313_v16, inf  ;;  %vm318_vm5 = vcmp.eq.f32.partialorder %v313_v16, 0.0  ;;  %p719_p9 = por %p718_p10, %p717_p7 }
  0x6e   : > { %644 = vrsqrt.f32 %v323_v22  ;;  %v1036_v26 = vadd.f32 1e-06, %v359_v23  ;;  %v369_v27 = vmul.f32 %v368_v24, %v357_v18  ;;  %v319_v39 = vand.u32 2147483648, %v313_v16 }
  0x6f   : > { %v635_v25 = vpop.eup %634  ;;  %vm386_vm6 = vcmp.eq.f32.partialorder %v1030_v20, inf  ;;  %vm326_vm7 = vcmp.eq.f32.partialorder %v323_v22, inf  ;;  %v329_v41 = vand.u32 2147483648, %v323_v22  ;;  %vm396_vm8 = vcmp.eq.f32.partialorder %v1032_v21, inf  ;;  %p720_p11 = pnand %p719_p9, %p713_p13 }
  0x70   : > { %v268_v29 = vmul.f32 %v635_v25, %v1025_v57  ;;  %646 = vrsqrt.f32 %v1036_v26  ;;  %v370_v31 = vadd.f32 1e-06, %v369_v27  ;;  %vm328_vm9 = vcmp.eq.f32.partialorder %v323_v22, 0.0 }
  0x71   : > { %v637_v28 = vpop.eup %636  ;;  %vm388_vm10 = vcmp.eq.f32.partialorder %v1030_v20, 0.0  ;;  %v389_v49 = vand.u32 2147483648, %v1030_v20  ;;  %vm363_vm11 = vcmp.eq.f32.partialorder %v1036_v26, inf  ;;  %vm398_vm12 = vcmp.eq.f32.partialorder %v1032_v21, 0.0 }
  0x72   : > { %v278_v30 = vmul.f32 %v637_v28, %v276_v3  ;;  %648 = vrsqrt.f32 %v370_v31  ;;  %v270_v35 = vsel %vm269_vm0, %v1025_v57, %v268_v29  ;;  %v399_v51 = vand.u32 2147483648, %v1032_v21 }
  0x73   : > { %v273_v44 = vsel %vm271_vm2, %v272_v32, %v270_v35  ;;  %v366_v59 = vand.u32 2147483648, %v1036_v26  ;;  %vm365_vm13 = vcmp.eq.f32.partialorder %v1036_v26, 0.0  ;;  %vm373_vm14 = vcmp.eq.f32.partialorder %v370_v31, inf }
  0x74   : > { %v280_v36 = vsel %vm279_vm1, %v276_v3, %v278_v30  ;;  %v376_v63 = vand.u32 2147483648, %v370_v31  ;;  %vm375_vm15 = vcmp.eq.f32.partialorder %v370_v31, 0.0 }
  0x75   : > { %v639_v34 = vpop.eup %638  ;;  %v283_v45 = vsel %vm281_vm3, %v282_v33, %v280_v36 }
  0x76   : > { %v641_v37 = vpop.eup %640  ;;  %v315_v38 = vmul.f32 %v639_v34, %v313_v16  ;;  %v284_v53 = vsub.f32 %v273_v44, %v283_v45 }
  0x77   : > { %v643_v40 = vpop.eup %642  ;;  %v385_v42 = vmul.f32 %v641_v37, %v1030_v20 }
  0x78   : > { %v645_v43 = vpop.eup %644  ;;  %v317_v46 = vsel %vm316_vm4, %v313_v16, %v315_v38  ;;  %v395_v47 = vmul.f32 %v643_v40, %v1032_v21  ;;  %v285_v2 = vand.u32 2147483647, %v284_v53 }
  0x79   : > { %v325_v48 = vmul.f32 %v645_v43, %v323_v22  ;;  %v320_v50 = vsel %vm318_vm5, %v319_v39, %v317_v46  ;;  %v387_v55 = vsel %vm386_vm6, %v1030_v20, %v385_v42 }
  0x7a   : > { %v647_v52 = vpop.eup %646  ;;  %v397_v56 = vsel %vm396_vm8, %v1032_v21, %v395_v47  ;;  %v390_v0 = vsel %vm388_vm10, %v389_v49, %v387_v55 }
  0x7b   : > { %v327_v54 = vsel %vm326_vm7, %v323_v22, %v325_v48  ;;  %v362_v58 = vmul.f32 %v647_v52, %v1036_v26  ;;  %v400_v1 = vsel %vm398_vm12, %v399_v51, %v397_v56 }
  0x7c   : > { %v330_v57 = vsel %vm328_vm9, %v329_v41, %v327_v54  ;;  %v649_v61 = vpop.eup %648  ;;  %v401_v7 = vsub.f32 %v390_v0, %v400_v1 }
  0x7d   : > { %v331_v60 = vsub.f32 %v320_v50, %v330_v57  ;;  %v364_v62 = vsel %vm363_vm11, %v1036_v26, %v362_v58  ;;  %v372_v4 = vmul.f32 %v649_v61, %v370_v31 }
  0x7e   : > { %v367_v5 = vsel %vm365_vm13, %v366_v59, %v364_v62  ;;  %v402_v12 = vand.u32 2147483647, %v401_v7 }
  0x7f   : > { %v332_v3 = vand.u32 2147483647, %v331_v60  ;;  %v374_v6 = vsel %vm373_vm14, %v370_v31, %v372_v4 }
  0x80   : > { %v377_v8 = vsel %vm375_vm15, %v376_v63, %v374_v6 }
  0x81   : > { %v333_v9 = vadd.f32 %v332_v3, %v285_v2  ;;  %v378_v10 = vsub.f32 %v367_v5, %v377_v8 }
  0x83   : > { %v379_v11 = vand.u32 2147483647, %v378_v10 }
  0x85   : > { %v380_v13 = vadd.f32 %v379_v11, %v333_v9 }
  0x87   : > { %v403_v14 = vadd.f32 %v402_v12, %v380_v13 }
  0x89   : > { %404 = vst [vmem:[%s221_s8] sm:$0x3] %v403_v14 }
  0x8a   : > { %723 = shalt.err (!%p720_p11)
}
  0x8b   : > { %s724_s27 = scalar_lea.hbm %s1078_s4, 32  ;;  %s728_s30 = scalar_lea.hbm %s1127_s2, 64 }
  0x8c   : > { %p725_p1 = scmp.ne.s32.totalorder %s1078_s4, %s724_s27  ;;  %p729_p4 = scmp.lt.u32.totalorder %s1078_s4, %s1127_s2 }
  0x8d   : > { %p730_p6 = scmp.lt.u32.totalorder %s728_s30, %s724_s27  ;;  %p732_p0 = scmp.lt.u32.totalorder %s724_s27, %s1078_s4 }
  0x8e   : > { %p726_p5 = pnand %p725_p1, %p1138_p3 }
  0x8f   : > { %p731_p8 = por %p730_p6, %p729_p4 }
  0x90   : > { %p727_p2 = pneg %p726_p5 }
  0x91   : > { %p733_p12 = por %p732_p0, %p731_p8 }
  0x93   : > { %p734_p13 = pnand %p733_p12, %p727_p2 }
  0x95   : > { %737 = shalt.err (!%p734_p13)
}
  0x96   : > { %569 = dma.vmem_to_hbm [thread:$0]  (%p1138_p3), %s1073_s18, 32, %s1078_s4, %s406_s15  }
  0x97 PF: > { %s432_s7 = sand.u32 1, %s776_s9   ;;  %p1139_p7 = scmp.ne.s32.totalorder %s1133_s24, 0 }
  0x98   : > { %p1140_p10 = scmp.ge.s32.totalorder %s796_s14, 2  ;;  %s433_s21 = scalar_lea.sflag [#allocation4], %s432_s7 }
  0x9a   : > { %p579_p9 = pnand %p1140_p10, %p1139_p7 }
  0x9c   : > { %771 = dma.done.wait (!%p579_p9), %s433_s21, 32  }
  0x9d   : > { %773 = vsyncadd (!%p579_p9), %s433_s21, 4294967264  ;;  %s21_s14 = sadd.s32 1, %s796_s14   ;;  %s1141_s9 = smov %s780_s10 }
  0x9e   : > { %p18_p11 = scmp.ge.s32.totalorder %s21_s14, 4   ;;  %s1142_s10 = smov %s784_s11 }
  0x9f   : > { %s1143_s11 = smov %s874_s23  ;;  %s1144_s12 = smov %s792_s13 }
  0xa0   : > { %s1145_s13 = smov %s1147_s17  ;;  %20 = sbr.rel (!%p18_p11) target bundleno = 8 (0x8), region = 108 }
  0xa7   :  { %438 = vsyncpa [#allocation3], 1 }
  0xa8   :  { %440 = vsyncpa [#allocation3 + $0x1], 1 }
  0xa9   :  { %441 = vsyncpa [#allocation6], 1 }
  0xaa   :  { %443 = vsyncpa [#allocation6 + $0x1], 1 }
  0xab   :  { %444 = vsyncpa [#allocation4], 1 }
  0xac   :  { %446 = vsyncpa [#allocation4 + $0x1], 1 }

</bundles_post_ra>
